<compile_context>
chip_gen: v7x
topology: tpu7x:2x2x1
jax: 0.10.0
libtpu: 0.0.40
codegen_flags: <defaults>
</compile_context>

<pallas_src>
import jax
import jax.numpy as jnp
from jax.experimental import pallas as pl
from jax.experimental.pallas import tpu as pltpu

N_CLASSES = 10
N_PAD = 128  # lane-dense padded class dimension
H1 = 128     # fc0 out
H2 = 64      # fc1 out


def _round_up(x, m):
    return ((x + m - 1) // m) * m


def _vmem_capacity_bytes():
    """Physical VMEM per core; conservative 64 MiB (v7x) if the query fails."""
    try:
        info = pltpu.get_tpu_info()
        cap = getattr(info, "vmem_capacity_bytes", None)
        if cap:
            return int(cap)
    except Exception:
        pass
    return 64 * 1024 * 1024


def _footprint_bytes(TB, TK, x_bytes, out_bytes):
    """Conservative VMEM footprint of one grid step (double-buffered tiles)."""
    x_tiles = 2 * TB * TK * x_bytes          # x blocks (native dtype)
    x_cast = TB * TK * 2                     # in-kernel bf16 copy of the tile
    w0_tiles = 2 * TK * H1 * 2               # bf16 w0 K-slice (double-buffered)
    w_rest = 2 * ((H1 * H2 + H2 * N_PAD) * 2 + (H1 + H2 + N_PAD) * 4)
    out_tiles = 2 * TB * N_PAD * out_bytes   # output blocks
    acc = TB * N_PAD * 4                     # f32 accumulator scratch
    interm = 6 * TB * N_PAD * 4              # h0/h1/logits/exp temporaries
    return x_tiles + x_cast + w0_tiles + w_rest + out_tiles + acc + interm


def _mlp_kernel(x_ref, w0_ref, b0_ref, w1_ref, b1_ref, w2_ref, b2_ref,
                out_ref, acc_ref):
    k = pl.program_id(1)

    @pl.when(k == 0)
    def _():
        acc_ref[...] = jnp.zeros_like(acc_ref)

    # fc0 partial product: cast x tile to the MXU dtype in-kernel (VPU cast),
    # accumulate in f32.
    xb = x_ref[...].astype(w0_ref.dtype)
    acc_ref[...] += jnp.dot(xb, w0_ref[...], preferred_element_type=jnp.float32)

    @pl.when(k == pl.num_programs(1) - 1)
    def _():
        # sigmoid(z) = 0.5 * tanh(z/2) + 0.5  -> single EUP transcendental.
        h0 = acc_ref[...] + b0_ref[...]
        h0 = 0.5 * jnp.tanh(0.5 * h0) + 0.5

        # fc1 + sigmoid : (TB, 128) @ (128, 64)
        h1 = jnp.dot(h0.astype(w1_ref.dtype), w1_ref[...],
                     preferred_element_type=jnp.float32) + b1_ref[...]
        h1 = 0.5 * jnp.tanh(0.5 * h1) + 0.5

        # fc2 : (TB, 64) @ (64, 128) — padded classes carry bias -1e30.
        logits = jnp.dot(h1.astype(w2_ref.dtype), w2_ref[...],
                         preferred_element_type=jnp.float32) + b2_ref[...]

        # log_softmax over last dim in f32 (padded cols exp to 0).
        m = jnp.max(logits, axis=-1, keepdims=True)
        shifted = logits - m
        lse = jnp.log(jnp.sum(jnp.exp(shifted), axis=-1, keepdims=True))
        out_ref[...] = (shifted - lse).astype(out_ref.dtype)


def model_f_forward(x, params, *, mxu_dtype=jnp.bfloat16, out_dtype=jnp.float32):
    """x: any shape whose trailing dims flatten to image_size (NCHW image ok)."""
    w0, b0, w1, b1, w2, b2 = params
    image_size, h1_dim = w0.shape          # (image_size, 128)
    h2_dim = w1.shape[1]                   # 64
    n_cls = w2.shape[1]                    # 10

    # Glue: torch .view(-1, image_size). No dtype cast here — the kernel casts.
    x2d = x.reshape(-1, image_size)
    if x2d.dtype not in (jnp.float32, jnp.bfloat16):
        x2d = x2d.astype(jnp.float32)
    B = x2d.shape[0]
    x_bytes = x2d.dtype.itemsize
    out_bytes = jnp.dtype(out_dtype).itemsize

    # ---- tile selection (generation-aware VMEM budget) ----
    vmem_cap = _vmem_capacity_bytes()
    budget = int(min(0.6 * vmem_cap, 48 * 1024 * 1024))

    TB = min(1024, max(16, _round_up(B, 16)))
    # v7x megacore: keep >= 2 grid steps for small-but-not-tiny batches.
    if B > 32 and pl.cdiv(B, TB) < 2:
        TB = max(16, _round_up(pl.cdiv(B, 2), 16))

    TK = image_size
    # Shrink the batch tile first (down to 256), then tile the K/reduction axis
    # (large image_size), then shrink the batch tile further as a last resort.
    while _footprint_bytes(TB, TK, x_bytes, out_bytes) > budget and TB > 256:
        TB = max(256, _round_up(TB // 2, 16))
    while _footprint_bytes(TB, TK, x_bytes, out_bytes) > budget and TK > 1024:
        TK = _round_up(TK // 2, 128)
    while _footprint_bytes(TB, TK, x_bytes, out_bytes) > budget and TB > 16:
        TB = max(16, _round_up(TB // 2, 16))

    n_k = pl.cdiv(image_size, TK)
    k_pad = n_k * TK

    # Weights / biases (small; cast & pad once in the wrapper).
    w0m = w0.astype(mxu_dtype)
    w1m = w1.astype(mxu_dtype)
    if k_pad != image_size:
        # Rare large-image_size path: zero-pad the reduction axis so every K
        # block of both x and w0 is fully valid.
        x2d = jnp.pad(x2d, ((0, 0), (0, k_pad - image_size)))
        w0m = jnp.pad(w0m, ((0, k_pad - image_size), (0, 0)))

    # Lane-dense output: pad classes 10 -> 128 with bias -1e30 (softmax-neutral).
    w2p = jnp.zeros((h2_dim, N_PAD), mxu_dtype).at[:, :n_cls].set(w2.astype(mxu_dtype))
    b2p = jnp.full((1, N_PAD), -1e30, jnp.float32).at[:, :n_cls].set(
        b2.reshape(1, -1).astype(jnp.float32))
    b0r = b0.reshape(1, -1).astype(jnp.float32)
    b1r = b1.reshape(1, -1).astype(jnp.float32)

    # VMEM limit: actual footprint + headroom; never the whole physical VMEM.
    fp = _footprint_bytes(TB, TK, x_bytes, out_bytes)
    vmem_limit = int(min(max(int(fp * 1.5) + (2 << 20), 8 << 20),
                         int(0.7 * vmem_cap)))

    # Advisory cost estimate so XLA can overlap neighbouring ops.
    flops = 2 * B * (image_size * h1_dim + h1_dim * h2_dim + h2_dim * n_cls)
    transcendentals = B * (h1_dim + h2_dim + N_PAD)
    bytes_accessed = (B * image_size * x_bytes
                      + (k_pad * h1_dim + h1_dim * h2_dim + h2_dim * N_PAD) * 2
                      + B * N_PAD * out_bytes)
    cost = pl.CostEstimate(flops=flops, transcendentals=transcendentals,
                           bytes_accessed=bytes_accessed)

    grid = (pl.cdiv(B, TB), n_k)  # ragged last batch tile; no wrapper-side pad

    out_pad = pl.pallas_call(
        _mlp_kernel,
        out_shape=jax.ShapeDtypeStruct((B, N_PAD), out_dtype),
        grid=grid,
        in_specs=[
            pl.BlockSpec((TB, TK), lambda i, k: (i, k)),           # x tile
            pl.BlockSpec((TK, h1_dim), lambda i, k: (k, 0)),       # w0 K-slice
            pl.BlockSpec((1, h1_dim), lambda i, k: (0, 0)),        # b0
            pl.BlockSpec((h1_dim, h2_dim), lambda i, k: (0, 0)),   # w1 (resident)
            pl.BlockSpec((1, h2_dim), lambda i, k: (0, 0)),        # b1
            pl.BlockSpec((h2_dim, N_PAD), lambda i, k: (0, 0)),    # w2 (padded)
            pl.BlockSpec((1, N_PAD), lambda i, k: (0, 0)),         # b2 (padded)
        ],
        out_specs=pl.BlockSpec((TB, N_PAD), lambda i, k: (i, 0)),
        scratch_shapes=[pltpu.VMEM((TB, h1_dim), jnp.float32)],    # fc0 accumulator
        compiler_params=pltpu.CompilerParams(
            dimension_semantics=("parallel", "arbitrary"),
            vmem_limit_bytes=vmem_limit,
        ),
        cost_estimate=cost,
    )(x2d, w0m, b0r, w1m, b1r, w2p, b2p)

    # (B, 10) view of the lane-dense output; fuses into the consumer under jit.
    return out_pad[:, :n_cls]


def _ref_forward(x, params):
    """Pure-JAX f32 reference of the PyTorch forward."""
    w0, b0, w1, b1, w2, b2 = params
    x2d = x.reshape(-1, w0.shape[0]).astype(jnp.float32)
    h0 = jax.nn.sigmoid(x2d @ w0 + b0)
    h1 = jax.nn.sigmoid(h0 @ w1 + b1)
    logits = h1 @ w2 + b2
    return jax.nn.log_softmax(logits, axis=1)


def init_params(key, image_size):
    """Deterministic init mimicking torch.nn.Linear default U(-1/sqrt(fan_in), +)."""
    def linear(k, fan_in, fan_out):
        kw, kb = jax.random.split(k)
        bound = 1.0 / jnp.sqrt(float(fan_in))
        w = jax.random.uniform(kw, (fan_in, fan_out), jnp.float32, -bound, bound)
        b = jax.random.uniform(kb, (1, fan_out), jnp.float32, -bound, bound)
        return w, b

    k0, k1, k2 = jax.random.split(key, 3)
    w0, b0 = linear(k0, image_size, H1)
    w1, b1 = linear(k1, H1, H2)
    w2, b2 = linear(k2, H2, N_CLASSES)
    return (w0, b0, w1, b1, w2, b2)


if __name__ == "__main__":
    key = jax.random.PRNGKey(0)
    k_x, k_p, k_x2 = jax.random.split(key, 3)

    # Small NCHW input: batch=2, channels=4, 16x16 -> image_size = 1024.
    B, C, H, W = 2, 4, 16, 16
    image_size = C * H * W
    x = jax.random.normal(k_x, (B, C, H, W), jnp.float32)
    params = init_params(k_p, image_size)

    out = model_f_forward(x, params)
    out = jax.block_until_ready(out)

    assert out.shape == (B, N_CLASSES), out.shape
    row_sums = jnp.sum(jnp.exp(out.astype(jnp.float32)), axis=1)
    assert jnp.allclose(row_sums, 1.0, atol=1e-3), row_sums
    ref = _ref_forward(x, params)
    assert jnp.allclose(out.astype(jnp.float32), ref, atol=2e-2, rtol=2e-2), (
        jnp.max(jnp.abs(out.astype(jnp.float32) - ref)))

    # Second check: ragged multi-tile grid (B=100 -> two batch tiles, masked tail).
    B2 = 100
    x2 = jax.random.normal(k_x2, (B2, C, H, W), jnp.float32)
    out2 = jax.block_until_ready(model_f_forward(x2, params))
    assert out2.shape == (B2, N_CLASSES), out2.shape
    ref2 = _ref_forward(x2, params)
    assert jnp.allclose(out2.astype(jnp.float32), ref2, atol=2e-2, rtol=2e-2), (
        jnp.max(jnp.abs(out2.astype(jnp.float32) - ref2)))
    row_sums2 = jnp.sum(jnp.exp(out2.astype(jnp.float32)), axis=1)
    assert jnp.allclose(row_sums2, 1.0, atol=1e-3), row_sums2

    print("KERNEL_OK")
</pallas_src>

<mosaic_0001>
module attributes {stable_mosaic.version = 11 : i64} {
  func.func @_mlp_kernel(%arg0: i32, %arg1: i32, %arg2: memref<16x1024xf32, #tpu.memory_space<vmem>>, %arg3: memref<1024x128xbf16, #tpu.memory_space<vmem>>, %arg4: memref<1x128xf32, #tpu.memory_space<vmem>>, %arg5: memref<128x64xbf16, #tpu.memory_space<vmem>>, %arg6: memref<1x64xf32, #tpu.memory_space<vmem>>, %arg7: memref<64x128xbf16, #tpu.memory_space<vmem>>, %arg8: memref<1x128xf32, #tpu.memory_space<vmem>>, %arg9: memref<16x128xf32, #tpu.memory_space<vmem>>, %arg10: memref<16x128xf32, #tpu.memory_space<vmem>>) attributes {dimension_semantics = [#tpu.dimension_semantics<parallel>, #tpu.dimension_semantics<arbitrary>], iteration_bounds = array<i64: 1, 1>, scalar_prefetch = 0 : i64, scratch_operands = 1 : i64, tpu.core_type = #tpu.core_type<tc>, window_params = [{transform_indices = @transform_0, window_bounds = array<i64: 16, 1024>}, {transform_indices = @transform_1, window_bounds = array<i64: 1024, 128>}, {pipeline_mode = #tpu.pipeline_mode<synchronous>, transform_indices = @transform_2, window_bounds = array<i64: 1, 128>}, {pipeline_mode = #tpu.pipeline_mode<synchronous>, transform_indices = @transform_3, window_bounds = array<i64: 128, 64>}, {pipeline_mode = #tpu.pipeline_mode<synchronous>, transform_indices = @transform_4, window_bounds = array<i64: 1, 64>}, {pipeline_mode = #tpu.pipeline_mode<synchronous>, transform_indices = @transform_5, window_bounds = array<i64: 64, 128>}, {pipeline_mode = #tpu.pipeline_mode<synchronous>, transform_indices = @transform_6, window_bounds = array<i64: 1, 128>}, {transform_indices = @transform_7, window_bounds = array<i64: 16, 128>}]} {
    %c0_i32 = arith.constant 0 : i32
    %0 = arith.cmpi eq, %arg1, %c0_i32 : i32
    %1 = arith.extui %0 : i1 to i32
    %c0_i32_0 = arith.constant 0 : i32
    %2 = arith.cmpi ne, %1, %c0_i32_0 : i32
    scf.if %2 {
      %cst_10 = arith.constant 0.000000e+00 : f32
      %13 = vector.broadcast %cst_10 : f32 to vector<16x128xf32>
      %c0_11 = arith.constant 0 : index
      %c0_12 = arith.constant 0 : index
      %14 = vector.load %arg10[%c0_11, %c0_12] : memref<16x128xf32, #tpu.memory_space<vmem>>, vector<16x128xf32>
      tpu.vector_store %arg10[%c0_11, %c0_12], %13 {strides = array<i32>} : memref<16x128xf32, #tpu.memory_space<vmem>>, vector<16x128xf32>,
    } else {
    }
    %c0 = arith.constant 0 : index
    %c0_1 = arith.constant 0 : index
    %3 = vector.load %arg2[%c0, %c0_1] : memref<16x1024xf32, #tpu.memory_space<vmem>>, vector<16x1024xf32>
    %4 = arith.truncf %3 : vector<16x1024xf32> to vector<16x1024xbf16>
    %c0_2 = arith.constant 0 : index
    %c0_3 = arith.constant 0 : index
    %5 = vector.load %arg10[%c0_2, %c0_3] : memref<16x128xf32, #tpu.memory_space<vmem>>, vector<16x128xf32>
    %c0_4 = arith.constant 0 : index
    %c0_5 = arith.constant 0 : index
    %6 = vector.load %arg3[%c0_4, %c0_5] : memref<1024x128xbf16, #tpu.memory_space<vmem>>, vector<1024x128xbf16>
    %cst = arith.constant dense<0.000000e+00> : vector<16x128xf32>
    %7 = tpu.matmul %4, %6, %cst {dimension_numbers = #tpu.dot_dimension_numbers<[1], [0], [0], [1], [0, 0, 1, 1], [], []>} : vector<16x1024xbf16>, vector<1024x128xbf16>, vector<16x128xf32> -> vector<16x128xf32>
    %8 = arith.addf %5, %7 : vector<16x128xf32>
    %c0_6 = arith.constant 0 : index
    %c0_7 = arith.constant 0 : index
    %9 = vector.load %arg10[%c0_6, %c0_7] : memref<16x128xf32, #tpu.memory_space<vmem>>, vector<16x128xf32>
    tpu.vector_store %arg10[%c0_6, %c0_7], %8 {strides = array<i32>} : memref<16x128xf32, #tpu.memory_space<vmem>>, vector<16x128xf32>,
    %c0_i32_8 = arith.constant 0 : i32
    %10 = arith.cmpi eq, %arg1, %c0_i32_8 : i32
    %11 = arith.extui %10 : i1 to i32
    %c0_i32_9 = arith.constant 0 : i32
    %12 = arith.cmpi ne, %11, %c0_i32_9 : i32
    scf.if %12 {
      %c0_10 = arith.constant 0 : index
      %c0_11 = arith.constant 0 : index
      %13 = vector.load %arg10[%c0_10, %c0_11] : memref<16x128xf32, #tpu.memory_space<vmem>>, vector<16x128xf32>
      %c0_12 = arith.constant 0 : index
      %c0_13 = arith.constant 0 : index
      %14 = vector.load %arg4[%c0_12, %c0_13] : memref<1x128xf32, #tpu.memory_space<vmem>>, vector<1x128xf32>
      %15 = vector.broadcast %14 : vector<1x128xf32> to vector<16x128xf32>
      %16 = arith.addf %13, %15 : vector<16x128xf32>
      %cst_14 = arith.constant 5.000000e-01 : f32
      %17 = vector.broadcast %cst_14 : f32 to vector<16x128xf32>
      %18 = arith.mulf %17, %16 : vector<16x128xf32>
      %19 = math.tanh %18 : vector<16x128xf32>
      %cst_15 = arith.constant 5.000000e-01 : f32
      %20 = vector.broadcast %cst_15 : f32 to vector<16x128xf32>
      %21 = arith.mulf %20, %19 : vector<16x128xf32>
      %cst_16 = arith.constant 5.000000e-01 : f32
      %22 = vector.broadcast %cst_16 : f32 to vector<16x128xf32>
      %23 = arith.addf %21, %22 : vector<16x128xf32>
      %24 = arith.truncf %23 : vector<16x128xf32> to vector<16x128xbf16>
      %c0_17 = arith.constant 0 : index
      %c0_18 = arith.constant 0 : index
      %25 = vector.load %arg5[%c0_17, %c0_18] : memref<128x64xbf16, #tpu.memory_space<vmem>>, vector<128x64xbf16>
      %cst_19 = arith.constant dense<0.000000e+00> : vector<16x64xf32>
      %26 = tpu.matmul %24, %25, %cst_19 {dimension_numbers = #tpu.dot_dimension_numbers<[1], [0], [0], [1], [0, 0, 1, 1], [], []>} : vector<16x128xbf16>, vector<128x64xbf16>, vector<16x64xf32> -> vector<16x64xf32>
      %c0_20 = arith.constant 0 : index
      %c0_21 = arith.constant 0 : index
      %27 = vector.load %arg6[%c0_20, %c0_21] : memref<1x64xf32, #tpu.memory_space<vmem>>, vector<1x64xf32>
      %28 = vector.broadcast %27 : vector<1x64xf32> to vector<16x64xf32>
      %29 = arith.addf %26, %28 : vector<16x64xf32>
      %cst_22 = arith.constant 5.000000e-01 : f32
      %30 = vector.broadcast %cst_22 : f32 to vector<16x64xf32>
      %31 = arith.mulf %30, %29 : vector<16x64xf32>
      %32 = math.tanh %31 : vector<16x64xf32>
      %cst_23 = arith.constant 5.000000e-01 : f32
      %33 = vector.broadcast %cst_23 : f32 to vector<16x64xf32>
      %34 = arith.mulf %33, %32 : vector<16x64xf32>
      %cst_24 = arith.constant 5.000000e-01 : f32
      %35 = vector.broadcast %cst_24 : f32 to vector<16x64xf32>
      %36 = arith.addf %34, %35 : vector<16x64xf32>
      %37 = arith.truncf %36 : vector<16x64xf32> to vector<16x64xbf16>
      %c0_25 = arith.constant 0 : index
      %c0_26 = arith.constant 0 : index
      %38 = vector.load %arg7[%c0_25, %c0_26] : memref<64x128xbf16, #tpu.memory_space<vmem>>, vector<64x128xbf16>
      %cst_27 = arith.constant dense<0.000000e+00> : vector<16x128xf32>
      %39 = tpu.matmul %37, %38, %cst_27 {dimension_numbers = #tpu.dot_dimension_numbers<[1], [0], [0], [1], [0, 0, 1, 1], [], []>} : vector<16x64xbf16>, vector<64x128xbf16>, vector<16x128xf32> -> vector<16x128xf32>
      %c0_28 = arith.constant 0 : index
      %c0_29 = arith.constant 0 : index
      %40 = vector.load %arg8[%c0_28, %c0_29] : memref<1x128xf32, #tpu.memory_space<vmem>>, vector<1x128xf32>
      %41 = vector.broadcast %40 : vector<1x128xf32> to vector<16x128xf32>
      %42 = arith.addf %39, %41 : vector<16x128xf32>
      %cst_30 = arith.constant dense<0xFF800000> : vector<16xf32>
      %43 = vector.multi_reduction <maximumf>, %42, %cst_30 [1] : vector<16x128xf32> to vector<16xf32>
      %44 = vector.shape_cast %43 : vector<16xf32> to vector<16x1xf32>
      %45 = vector.broadcast %44 : vector<16x1xf32> to vector<16x128xf32>
      %46 = arith.subf %42, %45 : vector<16x128xf32>
      %47 = math.exp %46 : vector<16x128xf32>
      %cst_31 = arith.constant dense<0.000000e+00> : vector<16xf32>
      %48 = vector.multi_reduction <add>, %47, %cst_31 [1] : vector<16x128xf32> to vector<16xf32>
      %49 = vector.shape_cast %48 : vector<16xf32> to vector<16x1xf32>
      %50 = math.log %49 : vector<16x1xf32>
      %51 = vector.broadcast %50 : vector<16x1xf32> to vector<16x128xf32>
      %52 = arith.subf %46, %51 : vector<16x128xf32>
      %c0_32 = arith.constant 0 : index
      %c0_33 = arith.constant 0 : index
      %53 = vector.load %arg9[%c0_32, %c0_33] : memref<16x128xf32, #tpu.memory_space<vmem>>, vector<16x128xf32>
      tpu.vector_store %arg9[%c0_32, %c0_33], %52 {strides = array<i32>} : memref<16x128xf32, #tpu.memory_space<vmem>>, vector<16x128xf32>,
    } else {
    }
    return
  }
  func.func @transform_0(%arg0: i32, %arg1: i32) -> (i32, i32) {
    %c0_i32 = arith.constant 0 : i32
    return %arg0, %arg1 : i32, i32
  }
  func.func @transform_1(%arg0: i32, %arg1: i32) -> (i32, i32) {
    %c0_i32 = arith.constant 0 : i32
    %c0_i32_0 = arith.constant 0 : i32
    return %arg1, %c0_i32 : i32, i32
  }
  func.func @transform_2(%arg0: i32, %arg1: i32) -> (i32, i32) {
    %c0_i32 = arith.constant 0 : i32
    %c0_i32_0 = arith.constant 0 : i32
    %c0_i32_1 = arith.constant 0 : i32
    return %c0_i32, %c0_i32_0 : i32, i32
  }
  func.func @transform_3(%arg0: i32, %arg1: i32) -> (i32, i32) {
    %c0_i32 = arith.constant 0 : i32
    %c0_i32_0 = arith.constant 0 : i32
    %c0_i32_1 = arith.constant 0 : i32
    return %c0_i32, %c0_i32_0 : i32, i32
  }
  func.func @transform_4(%arg0: i32, %arg1: i32) -> (i32, i32) {
    %c0_i32 = arith.constant 0 : i32
    %c0_i32_0 = arith.constant 0 : i32
    %c0_i32_1 = arith.constant 0 : i32
    return %c0_i32, %c0_i32_0 : i32, i32
  }
  func.func @transform_5(%arg0: i32, %arg1: i32) -> (i32, i32) {
    %c0_i32 = arith.constant 0 : i32
    %c0_i32_0 = arith.constant 0 : i32
    %c0_i32_1 = arith.constant 0 : i32
    return %c0_i32, %c0_i32_0 : i32, i32
  }
  func.func @transform_6(%arg0: i32, %arg1: i32) -> (i32, i32) {
    %c0_i32 = arith.constant 0 : i32
    %c0_i32_0 = arith.constant 0 : i32
    %c0_i32_1 = arith.constant 0 : i32
    return %c0_i32, %c0_i32_0 : i32, i32
  }
  func.func @transform_7(%arg0: i32, %arg1: i32) -> (i32, i32) {
    %c0_i32 = arith.constant 0 : i32
    %c0_i32_0 = arith.constant 0 : i32
    return %arg0, %c0_i32 : i32, i32
  }
}

</mosaic_0001>

<bundles_post_ra>
// kernel: tpu_custom_call.1
= control target key start
LH: loop header
LB: loop body
LE: loop exit
PB: predicated region body
PF: predicated region fallthrough
CT: control target
= control target key end

     0   :  { %12 = vsyncpa [#allocation4], 0  ;;  %s1782_s0 = inlined_call_operand.vmem [shape: f32[2,1024], index: 0, kind: input, shape index: {}]   ;;  %s1783_s1 = inlined_call_operand.hbm [shape: bf16[1024,128], index: 1, kind: input, shape index: {}]   ;;  %s1784_s2 = inlined_call_operand.vmem [shape: f32[1,128], index: 2, kind: input, shape index: {}]   ;;  %s1785_s3 = inlined_call_operand.vmem [shape: bf16[128,64], index: 3, kind: input, shape index: {}]   ;;  %s1786_s4 = inlined_call_operand.vmem [shape: f32[1,64], index: 4, kind: input, shape index: {}]   ;;  %s1787_s5 = inlined_call_operand.vmem [shape: bf16[64,128], index: 5, kind: input, shape index: {}]   ;;  %s1788_s6 = inlined_call_operand.vmem [shape: f32[1,128], index: 6, kind: input, shape index: {}]   ;;  %s1789_s7 = inlined_call_operand.hbm [shape: f32[2,128], index: 7, kind: output, shape index: {}]  }
   0x1   :  { %13 = vsyncpa [#allocation5], 0  ;;  %s1584_s24 = smov [#allocation3]   ;;  %s1536_s28 = scalar_lea.hbm %s1783_s1, 8192 }
   0x2   :  { %s21_s25 = sshll.u32 %s1584_s24, 4  ;;  %p1537_p0 = scmp.ne.s32.totalorder %s1783_s1, %s1536_s28  ;;  %s22_s25 = int_to_ptr.vmem [resolvable:$true] %s21_s25 }
   0x3   :  { %p1540_p1 = scmp.lt.u32.totalorder %s1536_s28, %s1783_s1 }
   0x5   :  { %p1542_p2 = pnand %p1540_p1, %p1537_p0 }
   0x7   :  { %1545 = shalt.err (!%p1542_p2)
}
   0x8   :  { %s1546_s10 = scalar_lea.vmem %s22_s25, 8192  ;;  %p1551_p4 = scmp.lt.s32.totalorder %s22_s25, %s22_s25 }
   0x9   :  { %p1547_p3 = scmp.ne.s32.totalorder %s22_s25, %s1546_s10  ;;  %p1552_p5 = scmp.lt.s32.totalorder %s1546_s10, %s1546_s10 }
   0xb   :  { %p1553_p6 = por %p1552_p5, %p1551_p4 }
   0xd   :  { %p1554_p7 = pnand %p1553_p6, %p1547_p3 }
   0xf   :  { %1557 = shalt.err (!%p1554_p7)
}
  0x10   :  { %s1585_s11 = smov 64   ;;  %s1586_s12 = smov 4  }
  0x11   :  { %27 = dma.hbm_to_vmem [thread:$0]  %s1783_s1, 8192, %s22_s25, [#allocation4], %s1585_s11, %s1585_s11, %s1586_s12  }
  0x12   :  { %1580 = dma.done.wait [#allocation4], 8192  }
  0x13   :  { %1581 = vsyncadd [#allocation4], 4294959104  ;;  %v1420_v0 = vld [vmem:[#allocation3 + $0x40] sm:$0xff]   ;;  %v1424_v4 = vld [vmem:[#allocation3 + $0x48] sm:$0xff]   ;;  %v1587_v25 = vmov 1983009808   ;;  %v87_v27 = vlaneseq }
  0x14   :  { %v1421_v1 = vld [vmem:[#allocation3 + $0xc0] sm:$0xff]   ;;  %1277 = vmatprep.subr.bf16.mxu0 %v1420_v0  ;;  %v1425_v5 = vld [vmem:[#allocation3 + $0xc8] sm:$0xff]   ;;  %v1428_v8 = vld [vmem:[#allocation3 + $0x50] sm:$0xff]   ;;  %v85_v26 = vunpack.c.l.s4 %v1587_v25  ;;  %vm1589_vm0 = vmmov 0   ;;  %vm1113_vm1 = vcmask 523264  }
  0x15   :  { %v1422_v2 = vld [vmem:[#allocation3] sm:$0xff]   ;;  %1299 = vmatprep.subr.bf16.mxu1 %v1421_v1  ;;  %v1426_v6 = vld [vmem:[#allocation3 + $0x8] sm:$0xff]   ;;  %v1429_v9 = vld [vmem:[#allocation3 + $0xd0] sm:$0xff]   ;;  %v88_v33 = vshrl.u32 %v87_v27, 7 }
  0x16   :  { %v1423_v3 = vld [vmem:[#allocation3 + $0x80] sm:$0xff]   ;;  %1278 = vmatpush3.bf16.msra.mxu0 %v1422_v2  ;;  %v1427_v7 = vld [vmem:[#allocation3 + $0x88] sm:$0xff]   ;;  %v1430_v10 = vld [vmem:[#allocation3 + $0x10] sm:$0xff]   ;;  %v86_v32 = vunpack.c.0.s8 %v85_v26 }
  0x17   :  { %1300 = vmatpush3.bf16.msra.mxu1 %v1423_v3  ;;  %1279 = vmatprep.subr.bf16.mxu0 %v1424_v4  ;;  %v1431_v11 = vld [vmem:[#allocation3 + $0x90] sm:$0xff]   ;;  %v1432_v12 = vld [vmem:[#allocation3 + $0x58] sm:$0xff]   ;;  %v1436_v16 = vld [vmem:[#allocation3 + $0x60] sm:$0xff]  }
  0x18   :  { %1301 = vmatprep.subr.bf16.mxu1 %v1425_v5  ;;  %v1433_v13 = vld [vmem:[#allocation3 + $0xd8] sm:$0xff]   ;;  %v1437_v17 = vld [vmem:[#allocation3 + $0xe0] sm:$0xff]   ;;  %v1440_v20 = vld [vmem:[#allocation3 + $0x68] sm:$0xff]   ;;  %v1645_v37 = vsub.s32 %v86_v32, %v88_v33 }
  0x19   :  { %v1434_v14 = vld [vmem:[#allocation3 + $0x18] sm:$0xff]   ;;  %v1438_v18 = vld [vmem:[#allocation3 + $0x20] sm:$0xff]   ;;  %v1441_v21 = vld [vmem:[#allocation3 + $0xe8] sm:$0xff]  }
  0x1a   :  { %1280 = vmatpush3.bf16.msra.mxu0 %v1426_v6  ;;  %v1435_v15 = vld [vmem:[#allocation3 + $0x98] sm:$0xff]   ;;  %v1439_v19 = vld [vmem:[#allocation3 + $0xa0] sm:$0xff]   ;;  %v1442_v22 = vld [vmem:[#allocation3 + $0x28] sm:$0xff]  }
  0x1b   :  { %1302 = vmatpush3.bf16.msra.mxu1 %v1427_v7  ;;  %1281 = vmatprep.subr.bf16.mxu0 %v1428_v8  ;;  %v1443_v23 = vld [vmem:[#allocation3 + $0xa8] sm:$0xff]   ;;  %v1444_v24 = vld [vmem:[#allocation3 + $0x70] sm:$0xff]   ;;  %v1448_v31 = vld [vmem:[#allocation3 + $0x78] sm:$0xff]  }
  0x1c   :  { %1303 = vmatprep.subr.bf16.mxu1 %v1429_v9  ;;  %v1445_v28 = vld [vmem:[#allocation3 + $0xf0] sm:$0xff]   ;;  %v1449_v34 = vld [vmem:[#allocation3 + $0xf8] sm:$0xff]   ;;  %v1464_v53 = vld [vmem:[#allocation3 + $0x140] sm:$0xff]  }
  0x1d   :  { %v1446_v29 = vld [vmem:[#allocation3 + $0x30] sm:$0xff]   ;;  %v1450_v35 = vld [vmem:[#allocation3 + $0x38] sm:$0xff]   ;;  %v1465_v58 = vld [vmem:[#allocation3 + $0x1c0] sm:$0xff]  }
  0x1e   :  { %1282 = vmatpush3.bf16.msra.mxu0 %v1430_v10  ;;  %v1447_v30 = vld [vmem:[#allocation3 + $0xb0] sm:$0xff]   ;;  %v1451_v36 = vld [vmem:[#allocation3 + $0xb8] sm:$0xff]   ;;  %v1466_v62 = vld [vmem:[#allocation3 + $0x100] sm:$0xff]  }
  0x1f   :  { %1304 = vmatpush3.bf16.msra.mxu1 %v1431_v11  ;;  %1283 = vmatprep.subr.bf16.mxu0 %v1432_v12  ;;  %v1452_v38 = vld [vmem:[%s1782_s0] ss:$16 sps:$4 sm:$0xff]   ;;  %v1460_v43 = vld [vmem:[%s1782_s0 + $0x4] ss:$16 sps:$4 sm:$0xff]   ;;  %v1468_v4 = vld [vmem:[#allocation3 + $0x148] sm:$0xff]  }
  0x20   :  { %1305 = vmatprep.subr.bf16.mxu1 %v1433_v13  ;;  %v1454_v39 = vld [vmem:[%s1782_s0 + $0x20] ss:$16 sps:$4 sm:$0xff]   ;;  %v90_v42 = vrot.slane %v1452_v38, %v1645_v37  ;;  %v1461_v44 = vld [vmem:[%s1782_s0 + $0x24] ss:$16 sps:$4 sm:$0xff]   ;;  %v97_v50 = vrot.slane %v1460_v43, %v1645_v37  ;;  %v1469_v7 = vld [vmem:[#allocation3 + $0x1c8] sm:$0xff]  }
  0x21   :  { %v1456_v40 = vld [vmem:[%s1782_s0 + $0x40] ss:$16 sps:$4 sm:$0xff]   ;;  %v1462_v45 = vld [vmem:[%s1782_s0 + $0x44] ss:$16 sps:$4 sm:$0xff]   ;;  %v104_v46 = vrot.slane %v1454_v39, %v1645_v37  ;;  %v111_v51 = vrot.slane %v1461_v44, %v1645_v37  ;;  %v1470_v8 = vld [vmem:[#allocation3 + $0x108] sm:$0xff]  }
  0x22   :  { %1284 = vmatpush3.bf16.msra.mxu0 %v1434_v14  ;;  %v1458_v41 = vld [vmem:[%s1782_s0 + $0x60] ss:$16 sps:$4 sm:$0xff]   ;;  %v162_v47 = vrot.slane %v1456_v40, %v1645_v37  ;;  %v1463_v49 = vld [vmem:[%s1782_s0 + $0x64] ss:$16 sps:$4 sm:$0xff]   ;;  %v169_v52 = vrot.slane %v1462_v45, %v1645_v37  ;;  %v1471_v9 = vld [vmem:[#allocation3 + $0x188] sm:$0xff]  }
  0x23   :  { %1306 = vmatpush3.bf16.msra.mxu1 %v1435_v15  ;;  %1285 = vmatprep.subr.bf16.mxu0 %v1436_v16  ;;  %v176_v48 = vrot.slane %v1458_v41, %v1645_v37  ;;  %v113_v54 = vcombine.high %v90_v42, %v104_v46  ;;  %v183_v56 = vrot.slane %v1463_v49, %v1645_v37  ;;  %v1467_v2 = vld [vmem:[#allocation3 + $0x180] sm:$0xff]   ;;  %v1472_v10 = vld [vmem:[#allocation3 + $0x150] sm:$0xff]   ;;  %v1476_v14 = vld [vmem:[#allocation3 + $0x158] sm:$0xff]  }
  0x24   :  { %1307 = vmatprep.subr.bf16.mxu1 %v1437_v17  ;;  %v112_v57 = vcombine.low %v90_v42, %v104_v46  ;;  %v115_v59 = vcombine.high %v97_v50, %v111_v51  ;;  %v114_v61 = vcombine.low %v97_v50, %v111_v51  ;;  %v1473_v11 = vld [vmem:[#allocation3 + $0x1d0] sm:$0xff]   ;;  %v1477_v15 = vld [vmem:[#allocation3 + $0x1d8] sm:$0xff]   ;;  %v1487_v25 = vld [vmem:[#allocation3 + $0x1a8] sm:$0xff]  }
  0x25   :  { %v185_v55 = vcombine.high %v162_v47, %v176_v48  ;;  %v184_v60 = vcombine.low %v162_v47, %v176_v48  ;;  %v187_v0 = vcombine.high %v169_v52, %v183_v56  ;;  %v186_v1 = vcombine.low %v169_v52, %v183_v56  ;;  %v1474_v12 = vld [vmem:[#allocation3 + $0x110] sm:$0xff]   ;;  %v1478_v16 = vld [vmem:[#allocation3 + $0x118] sm:$0xff]  }
  0x26   :  { %1286 = vmatpush3.bf16.msra.mxu0 %v1438_v18  ;;  %v1475_v13 = vld [vmem:[#allocation3 + $0x190] sm:$0xff]   ;;  %v1479_v17 = vld [vmem:[#allocation3 + $0x198] sm:$0xff]   ;;  %v1480_v18 = vld [vmem:[#allocation3 + $0x160] sm:$0xff]  }
  0x27   :  { %1308 = vmatpush3.bf16.msra.mxu1 %v1439_v19  ;;  %1287 = vmatprep.subr.bf16.mxu0 %v1440_v20  ;;  %v241_v63 = vpack.c.bf16 %v185_v55, %v113_v54  ;;  %v240_v3 = vpack.c.bf16 %v184_v60, %v112_v57  ;;  %v243_v5 = vpack.c.bf16 %v187_v0, %v115_v59  ;;  %v1481_v19 = vld [vmem:[#allocation3 + $0x1e0] sm:$0xff]   ;;  %v1488_v26 = vld [vmem:[#allocation3 + $0x170] sm:$0xff]   ;;  %v1494_v32 = vld [vmem:[#allocation3 + $0x138] sm:$0xff]  }
  0x28   :  { %1309 = vmatprep.subr.bf16.mxu1 %v1441_v21  ;;  %v242_v6 = vpack.c.bf16 %v186_v1, %v114_v61  ;;  %v1482_v20 = vld [vmem:[#allocation3 + $0x120] sm:$0xff]   ;;  %v1489_v27 = vld [vmem:[#allocation3 + $0x1f0] sm:$0xff]   ;;  %v1495_v33 = vld [vmem:[#allocation3 + $0x1b8] sm:$0xff]  }
  0x29   :  { %794 = vmatprep.mubr.bf16.mxu0 %v241_v63  ;;  %835 = vmatprep.mubr.bf16.mxu1 %v243_v5  ;;  %v1483_v21 = vld [vmem:[#allocation3 + $0x1a0] sm:$0xff]   ;;  %v1502_v38 = vld [vmem:[%s1782_s0 + $0x68] ss:$16 sps:$4 sm:$0xff]   ;;  %v1504_v39 = vld [vmem:[%s1782_s0 + $0xc] ss:$16 sps:$4 sm:$0xff]   ;;  %v1588_v63 = vmov 0.0  }
  0x2a   :  { %1288 = vmatpush3.bf16.msra.mxu0 %v1442_v22  ;;  %v1484_v22 = vld [vmem:[#allocation3 + $0x168] sm:$0xff]   ;;  %v212_v46 = vrot.slane %v1502_v38, %v1645_v37  ;;  %v133_v47 = vrot.slane %v1504_v39, %v1645_v37  ;;  %v1510_v1 = vld [vmem:[%s1785_s3 + $0x10] sm:$0xff]  }
  0x2b   :  { %1310 = vmatpush3.bf16.msra.mxu1 %v1443_v23  ;;  %1289 = vmatprep.subr.bf16.mxu0 %v1444_v24  ;;  %v1485_v23 = vld [vmem:[#allocation3 + $0x1e8] sm:$0xff]   ;;  %v1514_v5 = vld [vmem:[%s1785_s3 + $0x30] sm:$0xff]  }
  0x2c   :  { %1311 = vmatprep.subr.bf16.mxu1 %v1445_v28  ;;  %v1486_v24 = vld [vmem:[#allocation3 + $0x128] sm:$0xff]   ;;  %v1490_v28 = vld [vmem:[#allocation3 + $0x130] sm:$0xff]  }
  0x2d   :  { %v1505_v40 = vld [vmem:[%s1782_s0 + $0x2c] ss:$16 sps:$4 sm:$0xff]  }
  0x2e   :  { %1290 = vmatpush3.bf16.msra.mxu0 %v1446_v29  ;;  %v1491_v29 = vld [vmem:[#allocation3 + $0x1b0] sm:$0xff]   ;;  %v1506_v44 = vld [vmem:[%s1782_s0 + $0x4c] ss:$16 sps:$4 sm:$0xff]   ;;  %v147_v48 = vrot.slane %v1505_v40, %v1645_v37 }
  0x2f   :  { %1312 = vmatpush3.bf16.msra.mxu1 %v1447_v30  ;;  %1291 = vmatprep.subr.bf16.mxu0 %v1448_v31  ;;  %v1492_v30 = vld [vmem:[#allocation3 + $0x178] sm:$0xff]   ;;  %v205_v50 = vrot.slane %v1506_v44, %v1645_v37  ;;  %v1509_v0 = vld [vmem:[%s1785_s3 + $0x8] sm:$0xff]  }
  0x30   :  { %1313 = vmatprep.subr.bf16.mxu1 %v1449_v34  ;;  %v1493_v31 = vld [vmem:[#allocation3 + $0x1f8] sm:$0xff]   ;;  %v151_v54 = vcombine.high %v133_v47, %v147_v48  ;;  %v150_v56 = vcombine.low %v133_v47, %v147_v48 }
  0x31   :  { %v1496_v34 = vld [vmem:[%s1782_s0 + $0x8] ss:$16 sps:$4 sm:$0xff]   ;;  %v1507_v45 = vld [vmem:[%s1782_s0 + $0x6c] ss:$16 sps:$4 sm:$0xff]  }
  0x32   :  { %1292 = vmatpush3.bf16.msra.mxu0 %v1450_v35  ;;  %v1498_v35 = vld [vmem:[%s1782_s0 + $0x28] ss:$16 sps:$4 sm:$0xff]   ;;  %v126_v41 = vrot.slane %v1496_v34, %v1645_v37  ;;  %v219_v51 = vrot.slane %v1507_v45, %v1645_v37 }
  0x33   :  { %1314 = vmatpush3.bf16.msra.mxu1 %v1451_v36  ;;  %1321 = vmatprep.subr.bf16.mxu0 %v1464_v53  ;;  %v1500_v36 = vld [vmem:[%s1782_s0 + $0x48] ss:$16 sps:$4 sm:$0xff]   ;;  %v140_v42 = vrot.slane %v1498_v35, %v1645_v37 }
  0x34   :  { %1343 = vmatprep.subr.bf16.mxu1 %v1465_v58  ;;  %v198_v43 = vrot.slane %v1500_v36, %v1645_v37  ;;  %v223_v57 = vcombine.high %v205_v50, %v219_v51  ;;  %v222_v58 = vcombine.low %v205_v50, %v219_v51  ;;  %v1508_v37 = vld [vmem:[%s1785_s3] sm:$0xff]   ;;  %v1517_v51 = vld [vmem:[%s1787_s5 + $0x8] sm:$0xff]  }
  0x35   :  { %795 = vmatmul.mubr.bf16.vlgmr.msra.gmra.mrb[0].mxu0 %v240_v3  ;;  %v149_v49 = vcombine.high %v126_v41, %v140_v42  ;;  %v148_v52 = vcombine.low %v126_v41, %v140_v42  ;;  %v1512_v3 = vld [vmem:[%s1785_s3 + $0x20] sm:$0xff]  }
  0x36   :  { %1322 = vmatpush3.bf16.msra.mxu0 %v1466_v62  ;;  %836 = vmatmul.mubr.bf16.vlgmr.msra.gmra.mrb[0].mxu1 %v242_v6  ;;  %v221_v53 = vcombine.high %v198_v43, %v212_v46  ;;  %v220_v55 = vcombine.low %v198_v43, %v212_v46  ;;  %v247_v61 = vpack.c.bf16 %v223_v57, %v151_v54  ;;  %v1515_v6 = vld [vmem:[%s1785_s3 + $0x38] sm:$0xff]   ;;  %v1516_v50 = vld [vmem:[%s1787_s5] sm:$0xff]  }
  0x37   :  { %1323 = vmatprep.subr.bf16.mxu0 %v1468_v4  ;;  %1344 = vmatpush3.bf16.msra.mxu1 %v1467_v2  ;;  %v246_v62 = vpack.c.bf16 %v222_v58, %v150_v56  ;;  %v1511_v2 = vld [vmem:[%s1785_s3 + $0x18] sm:$0xff]   ;;  %v1513_v4 = vld [vmem:[%s1785_s3 + $0x28] sm:$0xff]   ;;  %v1262_v54 = vld [vmem:[%s1786_s4] ss:$0 sm:$0xff] }
  0x38   :  { %1345 = vmatprep.subr.bf16.mxu1 %v1469_v7  ;;  %v245_v59 = vpack.c.bf16 %v221_v53, %v149_v49  ;;  %v244_v60 = vpack.c.bf16 %v220_v55, %v148_v52  ;;  %917 = vmatprep.mubr.bf16.mxu1 %v247_v61  ;;  %v1518_v52 = vld [vmem:[%s1787_s5 + $0x10] sm:$0xff]   ;;  %v1519_v53 = vld [vmem:[%s1787_s5 + $0x18] sm:$0xff]  }
  0x3a   :  { %1324 = vmatpush3.bf16.msra.mxu0 %v1470_v8  ;;  %876 = vmatprep.mubr.bf16.mxu0 %v245_v59 }
  0x3b   :  { %1325 = vmatprep.subr.bf16.mxu0 %v1472_v10  ;;  %1346 = vmatpush3.bf16.msra.mxu1 %v1471_v9 }
  0x3c   :  { %1347 = vmatprep.subr.bf16.mxu1 %v1473_v11 }
  0x3e   :  { %1326 = vmatpush3.bf16.msra.mxu0 %v1474_v12 }
  0x3f   :  { %1327 = vmatprep.subr.bf16.mxu0 %v1476_v14  ;;  %1348 = vmatpush3.bf16.msra.mxu1 %v1475_v13 }
  0x40   :  { %1349 = vmatprep.subr.bf16.mxu1 %v1477_v15 }
  0x42   :  { %1328 = vmatpush3.bf16.msra.mxu0 %v1478_v16 }
  0x43   :  { %1329 = vmatprep.subr.bf16.mxu0 %v1480_v18  ;;  %1350 = vmatpush3.bf16.msra.mxu1 %v1479_v17 }
  0x44   :  { %1351 = vmatprep.subr.bf16.mxu1 %v1481_v19 }
  0x46   :  { %1330 = vmatpush3.bf16.msra.mxu0 %v1482_v20 }
  0x47   :  { %1331 = vmatprep.subr.bf16.mxu0 %v1484_v22  ;;  %1352 = vmatpush3.bf16.msra.mxu1 %v1483_v21 }
  0x48   :  { %1353 = vmatprep.subr.bf16.mxu1 %v1485_v23 }
  0x4a   :  { %1332 = vmatpush3.bf16.msra.mxu0 %v1486_v24 }
  0x4b   :  { %1333 = vmatprep.subr.bf16.mxu0 %v1488_v26  ;;  %1354 = vmatpush3.bf16.msra.mxu1 %v1487_v25 }
  0x4c   :  { %1355 = vmatprep.subr.bf16.mxu1 %v1489_v27 }
  0x4e   :  { %1334 = vmatpush3.bf16.msra.mxu0 %v1490_v28 }
  0x4f   :  { %1335 = vmatprep.subr.bf16.mxu0 %v1492_v30  ;;  %1356 = vmatpush3.bf16.msra.mxu1 %v1491_v29 }
  0x50   :  { %1357 = vmatprep.subr.bf16.mxu1 %v1493_v31 }
  0x52   :  { %1336 = vmatpush3.bf16.msra.mxu0 %v1494_v32 }
  0x53   :  { %1358 = vmatpush3.bf16.msra.mxu1 %v1495_v33  ;;  %1379 = vmatprep.subr.bf16.mxu0 %v1588_v63  ;;  %v1261_v33 = vld [vmem:[%s1784_s2] ss:$0 sm:$0xff] }
  0x54   :  { %1399 = vmatprep.subr.bf16.mxu1 %v1588_v63 }
  0x55   :  { %877 = vmatmul.mubr.bf16.vlgmr.msra.gmra.mrb[4].mxu0 %v244_v60 }
  0x56   :  { %918 = vmatmul.mubr.bf16.vlgmr.msra.gmra.mrb[4].mxu1 %v246_v62  ;;  %1380 = vmatpush3.bf16.msra.mxu0 %v1508_v37 }
  0x57   :  { %1381 = vmatprep.subr.bf16.mxu0 %v1588_v63  ;;  %1395 = vmatprep.mubr.msk.bf16.mxu0 %vm1589_vm0, %v1588_v63 }
  0x58   :  { %1407 = vmatprep.mubr.msk.bf16.mxu1 %vm1589_vm0, %v1588_v63  ;;  %1400 = vmatpush3.bf16.msra.mxu1 %v1516_v50 }
  0x59   :  { %1401 = vmatprep.subr.bf16.mxu1 %v1588_v63 }
  0x5a   :  { %1382 = vmatpush3.bf16.msra.mxu0 %v1509_v0 }
  0x5b   :  { %1383 = vmatprep.subr.bf16.mxu0 %v1588_v63 }
  0x5c   :  { %1402 = vmatpush3.bf16.msra.mxu1 %v1517_v51 }
  0x5d   :  { %1403 = vmatprep.subr.bf16.mxu1 %v1588_v63 }
  0x5e   :  { %1384 = vmatpush3.bf16.msra.mxu0 %v1510_v1 }
  0x5f   :  { %1385 = vmatprep.subr.bf16.mxu0 %v1588_v63 }
  0x60   :  { %1404 = vmatpush3.bf16.msra.mxu1 %v1518_v52 }
  0x61   :  { %1405 = vmatprep.subr.bf16.mxu1 %v1588_v63 }
  0x62   :  { %1386 = vmatpush3.bf16.msra.mxu0 %v1511_v2 }
  0x63   :  { %1387 = vmatprep.subr.bf16.mxu0 %v1588_v63 }
  0x64   :  { %1406 = vmatpush3.bf16.msra.mxu1 %v1519_v53 }
  0x66   :  { %1388 = vmatpush3.bf16.msra.mxu0 %v1512_v3 }
  0x67   :  { %1389 = vmatprep.subr.bf16.mxu0 %v1588_v63 }
  0x6a   :  { %1390 = vmatpush3.bf16.msra.mxu0 %v1513_v4 }
  0x6b   :  { %1391 = vmatprep.subr.bf16.mxu0 %v1588_v63 }
  0x6e   :  { %1392 = vmatpush3.bf16.msra.mxu0 %v1514_v5  ;;  %v1271_v5 = vld [vmem:[%s1788_s6] ss:$0 sm:$0xff] }
  0x6f   :  { %1393 = vmatprep.subr.bf16.mxu0 %v1588_v63 }
  0x72   :  { %1394 = vmatpush3.bf16.msra.mxu0 %v1515_v6 }
 0x108   :  { %v1293_v7 = vpop.f32.mrb[0].mxu0 }
 0x109   :  { %v1294_v8 = vpop.f32.mrb[1].mxu0  ;;  %v1315_v9 = vpop.f32.mrb[0].mxu1 }
 0x10a   :  { %v1295_v10 = vadd.f32 %v1294_v8, %v1293_v7  ;;  %v1296_v11 = vpop.f32.mrb[2].mxu0  ;;  %v1316_v12 = vpop.f32.mrb[1].mxu1 }
 0x10b   :  { %v1297_v13 = vpop.f32.mrb[3].mxu0  ;;  %v1317_v14 = vadd.f32 %v1316_v12, %v1315_v9  ;;  %v1318_v15 = vpop.f32.mrb[2].mxu1 }
 0x10c   :  { %v1298_v16 = vadd.f32 %v1297_v13, %v1296_v11  ;;  %v1319_v17 = vpop.f32.mrb[3].mxu1 }
 0x10d   :  { %v838_v18 = vadd.f32 %v1317_v14, %v1295_v10  ;;  %v1320_v19 = vadd.f32 %v1319_v17, %v1318_v15 }
 0x10f   :  { %v841_v20 = vadd.f32 %v1320_v19, %v1298_v16 }
 0x128   :  { %v1337_v21 = vpop.f32.mrb[4].mxu0 }
 0x129   :  { %v1359_v22 = vpop.f32.mrb[4].mxu1  ;;  %v1338_v23 = vpop.f32.mrb[5].mxu0 }
 0x12a   :  { %v1339_v24 = vadd.f32 %v1338_v23, %v1337_v21  ;;  %v1360_v25 = vpop.f32.mrb[5].mxu1  ;;  %v1340_v26 = vpop.f32.mrb[6].mxu0 }
 0x12b   :  { %v1361_v27 = vadd.f32 %v1360_v25, %v1359_v22  ;;  %v1362_v28 = vpop.f32.mrb[6].mxu1  ;;  %v1341_v29 = vpop.f32.mrb[7].mxu0 }
 0x12c   :  { %v879_v30 = vadd.f32 %v1339_v24, %v838_v18  ;;  %v1342_v31 = vadd.f32 %v1341_v29, %v1340_v26  ;;  %v1363_v32 = vpop.f32.mrb[7].mxu1 }
 0x12d   :  { %v1364_v34 = vadd.f32 %v1363_v32, %v1362_v28 }
 0x12e   :  { %v920_v35 = vadd.f32 %v1361_v27, %v879_v30  ;;  %v882_v36 = vadd.f32 %v1342_v31, %v841_v20 }
 0x130   :  { %v942_v38 = vadd.f32 %v1261_v33, %v920_v35  ;;  %v923_v39 = vadd.f32 %v1364_v34, %v882_v36 }
 0x132   :  { %v944_v40 = vmul.f32 0.5, %v942_v38  ;;  %v943_v41 = vadd.f32 %v1261_v33, %v923_v39 }
 0x134   :  { %1520 = vtanh.f32 %v944_v40  ;;  %v945_v42 = vmul.f32 0.5, %v943_v41 }
 0x136   :  { %1522 = vtanh.f32 %v945_v42 }
 0x13e   :  { %v1521_v43 = vpop.eup %1520 }
 0x13f   :  { %v948_v44 = vmul.f32 0.5, %v1521_v43 }
 0x140   :  { %v1523_v45 = vpop.eup %1522 }
 0x141   :  { %v949_v46 = vmul.f32 0.5, %v1523_v45  ;;  %v950_v47 = vadd.f32 0.5, %v948_v44 }
 0x143   :  { %v951_v48 = vadd.f32 0.5, %v949_v46 }
 0x145   :  { %v952_v49 = vpack.c.bf16 %v951_v48, %v950_v47 }
 0x147   :  { %1396 = vmatmul.mubr.bf16.vlgmr.msra.gmra.mrb[8].mxu0 %v952_v49 }
 0x21a   :  { %v1058_v55 = vpop.f32.mrb[8].mxu0 }
 0x21b   :  { %v1059_v56 = vadd.f32 %v1262_v54, %v1058_v55  ;;  %v1397_v57 = vpop.f32.mrb[9].mxu0 }
 0x21c   :  { %v1061_v58 = vpop.f32.mrb[10].mxu0 }
 0x21d   :  { %v1065_v59 = vmul.f32 0.5, %v1059_v56  ;;  %v1062_v60 = vadd.f32 %v1262_v54, %v1061_v58  ;;  %v1398_v61 = vpop.f32.mrb[11].mxu0 }
 0x21f   :  { %1524 = vtanh.f32 %v1065_v59  ;;  %v1066_v62 = vmul.f32 0.5, %v1062_v60 }
 0x221   :  { %1526 = vtanh.f32 %v1066_v62 }
 0x229   :  { %v1525_v63 = vpop.eup %1524 }
 0x22a   :  { %v1069_v37 = vmul.f32 0.5, %v1525_v63 }
 0x22b   :  { %v1527_v0 = vpop.eup %1526 }
 0x22c   :  { %v1070_v1 = vmul.f32 0.5, %v1527_v0  ;;  %v1071_v2 = vadd.f32 0.5, %v1069_v37 }
 0x22e   :  { %v1072_v3 = vadd.f32 0.5, %v1070_v1 }
 0x230   :  { %v1073_v4 = vpack.c.bf16 %v1072_v3, %v1071_v2 }
 0x232   :  { %1408 = vmatmul.mubr.msk.bf16.vlgmr.msra.gmra.mrb[8].mxu1 %vm1113_vm1, %v1073_v4 }
 0x305   :  { %v1151_v6 = vpop.f32.mrb[8].mxu1 }
 0x306   :  { %v1152_v7 = vadd.f32 %v1271_v5, %v1151_v6  ;;  %v1409_v8 = vpop.f32.mrb[9].mxu1 }
 0x307   :  { %v1154_v9 = vpop.f32.mrb[10].mxu1 }
 0x308   :  { %1158 = vmax.xlane.f32.xlu0 %v1152_v7  ;;  %v1410_v10 = vpop.f32.mrb[11].mxu1  ;;  %v1155_v11 = vadd.f32 %v1271_v5, %v1154_v9 }
 0x30c   :  { %1160 = vmax.xlane.f32.xlu0 %v1155_v11 }
 0x395   :  { %v1159_v12 = vpop.xlane.xlu0 %1158 }
 0x396   :  { %v1162_v13 = vsub.f32 %v1152_v7, %v1159_v12 }
 0x398   :  { %v1164_v14 = vmul.f32 1.442695, %v1162_v13 }
 0x399   :  { %v1161_v15 = vpop.xlane.xlu0 %1160 }
 0x39a   :  { %v1163_v16 = vsub.f32 %v1155_v11, %v1161_v15  ;;  %1528 = vpow2.f32 %v1164_v14 }
 0x39c   :  { %v1166_v17 = vmul.f32 1.442695, %v1163_v16 }
 0x39e   :  { %1530 = vpow2.f32 %v1166_v17 }
 0x3a4   :  { %v1529_v18 = vpop.eup %1528 }
 0x3a5   :  { %1168 = vadd.xlane.f32.xlu1 %v1529_v18 }
 0x3a8   :  { %v1531_v19 = vpop.eup %1530 }
 0x3a9   :  { %1170 = vadd.xlane.f32.xlu1 %v1531_v19 }
 0x432   :  { %v1169_v20 = vpop.xlane.xlu1 %1168 }
 0x433   :  { %1532 = vlog2.f32 %v1169_v20 }
 0x436   :  { %v1171_v21 = vpop.xlane.xlu1 %1170 }
 0x437   :  { %1534 = vlog2.f32 %v1171_v21 }
 0x43d   :  { %v1533_v22 = vpop.eup %1532 }
 0x43e   :  { %v1173_v23 = vmul.f32 0.6931472, %v1533_v22 }
 0x440   :  { %v1176_v24 = vsub.f32 %v1162_v13, %v1173_v23 }
 0x441   :  { %v1535_v25 = vpop.eup %1534 }
 0x442   :  { %1178 = vst [vmem:[#allocation6] sm:$0xff] %v1176_v24  ;;  %v1175_v26 = vmul.f32 0.6931472, %v1535_v25 }
 0x444   :  { %v1177_v27 = vsub.f32 %v1163_v16, %v1175_v26 }
 0x446   :  { %1179 = vst [vmem:[#allocation6 + $0x8] sm:$0xff] %v1177_v27 }
 0x447   :  { %1184 = vsyncadd [#allocation5], 224  ;;  %s1590_s6 = smov [#allocation6]  }
 0x448   :  { %s1185_s22 = sshll.u32 %s1590_s6, 4  ;;  %s1186_s22 = int_to_ptr.vmem [resolvable:$true] %s1185_s22 }
 0x449   :  { %s1558_s23 = scalar_lea.vmem %s1186_s22, 32  ;;  %s1562_s24 = scalar_lea.vmem %s1186_s22, 256 }
 0x44a   :  { %p1559_p8 = scmp.ne.s32.totalorder %s1186_s22, %s1558_s23  ;;  %p1563_p9 = scmp.lt.s32.totalorder %s1186_s22, %s1186_s22 }
 0x44b   :  { %p1564_p10 = scmp.lt.s32.totalorder %s1562_s24, %s1558_s23 }
 0x44d   :  { %p1565_p11 = por %p1564_p10, %p1563_p9 }
 0x44f   :  { %p1566_p12 = pnand %p1565_p11, %p1559_p8 }
 0x451   :  { %1569 = shalt.err (!%p1566_p12)
}
 0x452   :  { %s1570_s27 = scalar_lea.hbm %s1789_s7, 32 }
 0x453   :  { %p1571_p13 = scmp.ne.s32.totalorder %s1789_s7, %s1570_s27  ;;  %p1574_p0 = scmp.lt.u32.totalorder %s1570_s27, %s1789_s7 }
 0x455   :  { %p1576_p1 = pnand %p1574_p0, %p1571_p13 }
 0x457   :  { %1579 = shalt.err (!%p1576_p1)
}
 0x458   :  { %s1591_s9 = smov 32   ;;  %s1592_s10 = smov 2  }
 0x459   :  { %1191 = dma.vmem_to_hbm [thread:$0]  %s1186_s22, 32, %s1789_s7, [#allocation5], %s1591_s9, %s1591_s9, %s1592_s10  }
 0x45a   :  { %1582 = dma.done.wait [#allocation5], 256  }
 0x45b   :  { %1583 = vsyncadd [#allocation5], 4294967040 }
 0x45c   :  { %1195 = vsyncpa [#allocation4], 1 }
 0x45d   :  { %1196 = vsyncpa [#allocation5], 1 }

</bundles_post_ra>
